<compile_context>
chip_gen: v7x
topology: tpu7x:2x2x1
jax: 0.10.0
libtpu: 0.0.40
codegen_flags: <defaults>
</compile_context>

<pallas_src>
import functools

import jax
import jax.numpy as jnp
from jax.experimental import pallas as pl
from jax.experimental.pallas import tpu as pltpu

KH, KW, C_OUT = 4, 24, 16
FEAT = 4 * C_OUT            # 64 = [max | avg] x [branch1 | branch2]
HIDDEN = 128
BN_EPS = 1e-5

TILE_B = 8                  # batch samples per grid step (multiple of 8)

# Parameter slab layout (f32, 128 lanes). fc1 weight block starts at a multiple
# of 8 so its four 16-row sub-blocks are sublane-tile aligned.
_BC_ROW = 0                 # conv bias                 lanes 0:16
_B1_ROW = 1                 # fc1 bias (BN-folded)      lanes 0:128
_W2_ROW = 2                 # fc2 weight (row)          lanes 0:128
_B2_ROW = 3                 # fc2 bias                  lane 0
_W1_ROW = 8                 # fc1 weight (BN-folded), rows 8..71
_SLAB_ROWS = _W1_ROW + FEAT  # 72 (multiple of 8)


def net_kernel(tile_b, w_out, p_ref, wc_ref, slab_ref, out_ref):
    g = 2 * tile_b                                        # groups in this tile

    # ---- conv: ONE K=96 MXU matmul over all (window, group) rows, f32 acc ----
    y = jnp.dot(p_ref[...], wc_ref[...], preferred_element_type=jnp.float32)
    bc = slab_ref[_BC_ROW:_BC_ROW + 1, 0:C_OUT]           # (1, 16)
    y = jnp.maximum(y + bc, 0.0)                          # conv bias + ReLU

    # ---- max / avg pooling over the W_out conv windows -----------------------
    # Rows are window-major (row = w*g + group) and g is a multiple of 8, so the
    # reshape is tile-preserving and the reductions over axis 0 are whole-vreg
    # max/add ops (no sublane shuffles).
    y3 = y.reshape(w_out, g, C_OUT)
    mx = jnp.max(y3, axis=0)                              # (g, 16)
    av = jnp.sum(y3, axis=0) * (1.0 / w_out)              # (g, 16)

    # ---- fc1 (+ BatchNorm folded in on the host) ------------------------------
    # Instead of concatenating [max1|avg1|max2|avg2] along lanes, accumulate four
    # matmuls against the four aligned 16-row blocks of the folded fc1 weight.
    f32 = jnp.float32
    h = (jnp.dot(mx[:tile_b], slab_ref[_W1_ROW + 0:_W1_ROW + 16, :],
                 preferred_element_type=f32)
         + jnp.dot(av[:tile_b], slab_ref[_W1_ROW + 16:_W1_ROW + 32, :],
                   preferred_element_type=f32)
         + jnp.dot(mx[tile_b:], slab_ref[_W1_ROW + 32:_W1_ROW + 48, :],
                   preferred_element_type=f32)
         + jnp.dot(av[tile_b:], slab_ref[_W1_ROW + 48:_W1_ROW + 64, :],
                   preferred_element_type=f32)
         + slab_ref[_B1_ROW:_B1_ROW + 1, :])
    h = jnp.maximum(h, 0.0)

    # TODO(synk): training-mode Dropout(0.5) and batch-statistics BatchNorm are
    # not modeled; this kernel implements eval/inference semantics (dropout =
    # identity, BN running stats folded into fc1 on the host).

    # ---- fc2 + sigmoid, stored as a lane-dense (1, TILE_B) row ----------------
    w2 = slab_ref[_W2_ROW:_W2_ROW + 1, :]                 # (1, 128)
    b2 = slab_ref[_B2_ROW:_B2_ROW + 1, 0:1]               # (1, 1)
    logits = jax.lax.dot_general(w2, h, (((1,), (1,)), ((), ())),
                                 preferred_element_type=jnp.float32) + b2
    out_ref[...] = jax.nn.sigmoid(logits)                 # (1, TILE_B)


def _build_patches(x1p, x2p, n_tiles, tile_b, w_out):
    """Host im2col (one fused gather), window-major + branch-blocked per tile.

    x1p/x2p: (n_tiles*tile_b, KH, W) f32.
    Row (((t*w_out + w)*2 + branch)*tile_b + b), column kh*KW + kw.
    """
    idx = jnp.arange(w_out)[:, None] + jnp.arange(KW)[None, :]      # (w_out, KW)
    xs = jnp.stack([x1p, x2p], axis=1)                              # (Bp, 2, KH, W)
    xs = xs.reshape(n_tiles, tile_b, 2, KH, xs.shape[-1])
    pw = xs[..., idx]                                               # (T, tb, 2, KH, w_out, KW)
    pw = pw.transpose(0, 4, 2, 1, 3, 5)                             # (T, w_out, 2, tb, KH, KW)
    return pw.reshape(n_tiles * w_out * 2 * tile_b, KH * KW).astype(jnp.bfloat16)


@jax.jit
def net_forward(x1, x2, packed):
    B, C, H, W = x1.shape
    assert C == 1 and H == KH, "expected NCHW input with 1 channel, height 4"
    assert W >= KW
    w_out = W - KW + 1

    n_tiles = pl.cdiv(B, TILE_B)
    b_pad = n_tiles * TILE_B
    pad = b_pad - B
    x1p = jnp.pad(x1[:, 0].astype(jnp.float32), ((0, pad), (0, 0), (0, 0)))
    x2p = jnp.pad(x2[:, 0].astype(jnp.float32), ((0, pad), (0, 0), (0, 0)))
    patches = _build_patches(x1p, x2p, n_tiles, TILE_B, w_out)
    rows_t = w_out * 2 * TILE_B                                     # rows per tile

    kernel = functools.partial(net_kernel, TILE_B, w_out)
    out = pl.pallas_call(
        kernel,
        out_shape=jax.ShapeDtypeStruct((n_tiles, TILE_B), jnp.float32),
        grid=(n_tiles,),
        in_specs=[
            pl.BlockSpec((rows_t, KH * KW), lambda t: (t, 0)),      # patches (per tile)
            pl.BlockSpec((KH * KW, C_OUT), lambda t: (0, 0)),       # conv weight (resident)
            pl.BlockSpec((_SLAB_ROWS, 128), lambda t: (0, 0)),      # param slab (resident)
        ],
        out_specs=pl.BlockSpec((1, TILE_B), lambda t: (t, 0)),
        compiler_params=pltpu.CompilerParams(
            dimension_semantics=("parallel",)),
    )(patches, packed["wc"], packed["slab"])

    return out.reshape(n_tiles * TILE_B, 1)[:B]


# --------------------------- parameters / packing ---------------------------

def xavier_uniform(key, shape, fan_in, fan_out):
    bound = (6.0 / (fan_in + fan_out)) ** 0.5
    return jax.random.uniform(key, shape, jnp.float32, -bound, bound)


def init_params(key):
    k_conv, k_fc1, k_fc2 = jax.random.split(key, 3)
    # Conv2d(1, 16, (4, 24)): PyTorch weight (16,1,4,24), xavier_uniform, bias 0.
    wc = xavier_uniform(k_conv, (C_OUT, 1, KH, KW),
                        fan_in=1 * KH * KW, fan_out=C_OUT * KH * KW)
    return dict(
        wc=wc.reshape(C_OUT, KH * KW).T,                  # (96, 16), row = kh*KW+kw
        bc=jnp.zeros((C_OUT,), jnp.float32),
        gamma=jnp.ones((FEAT,), jnp.float32),             # BatchNorm1d defaults
        beta=jnp.zeros((FEAT,), jnp.float32),
        running_mean=jnp.zeros((FEAT,), jnp.float32),
        running_var=jnp.ones((FEAT,), jnp.float32),
        w1=xavier_uniform(k_fc1, (FEAT, HIDDEN), fan_in=FEAT, fan_out=HIDDEN),
        b1=jnp.zeros((HIDDEN,), jnp.float32),
        w2=xavier_uniform(k_fc2, (HIDDEN, 1), fan_in=HIDDEN, fan_out=1),
        b2=jnp.zeros((1,), jnp.float32),
    )


def pack_params(p):
    """Fold BN into fc1 and pack the small params into one (72,128) f32 slab.
    The conv weight is a separate host-cast bf16 (96,16) operand for the MXU."""
    bn_scale = p["gamma"] * jax.lax.rsqrt(p["running_var"] + BN_EPS)
    bn_shift = p["beta"] - p["running_mean"] * bn_scale
    w1_fold = bn_scale[:, None] * p["w1"]                 # (64, 128)
    b1_fold = p["b1"] + bn_shift @ p["w1"]                # (128,)

    slab = jnp.zeros((_SLAB_ROWS, 128), jnp.float32)
    slab = slab.at[_BC_ROW, 0:C_OUT].set(p["bc"])
    slab = slab.at[_B1_ROW, :].set(b1_fold)
    slab = slab.at[_W2_ROW, :].set(p["w2"][:, 0])
    slab = slab.at[_B2_ROW, 0].set(p["b2"][0])
    slab = slab.at[_W1_ROW:_W1_ROW + FEAT, :].set(w1_fold)
    return dict(slab=slab, wc=p["wc"].astype(jnp.bfloat16))


# ------------------------------- pure-JAX ref --------------------------------

def net_reference(x1, x2, p):
    """Straightforward f32 reference (eval semantics) for validation."""
    wc4 = p["wc"].T.reshape(C_OUT, 1, KH, KW)             # back to OIHW
    def branch(x):
        y = jax.lax.conv_general_dilated(
            x, wc4, (1, 1), "VALID",
            dimension_numbers=("NCHW", "OIHW", "NCHW"))   # (B,16,1,W_out)
        y = jnp.maximum(y + p["bc"][None, :, None, None], 0.0)[:, :, 0, :]
        return jnp.concatenate([y.max(axis=-1), y.mean(axis=-1)], axis=1)
    feats = jnp.concatenate([branch(x1), branch(x2)], axis=1)        # (B, 64)
    xbn = ((feats - p["running_mean"]) * jax.lax.rsqrt(p["running_var"] + BN_EPS)
           * p["gamma"] + p["beta"])
    h = jnp.maximum(xbn @ p["w1"] + p["b1"], 0.0)
    return jax.nn.sigmoid(h @ p["w2"] + p["b2"])


if __name__ == "__main__":
    key = jax.random.PRNGKey(0)
    k_params, k_x1, k_x2 = jax.random.split(key, 3)

    B, W = 2, 40                     # NCHW inputs (B, 1, 4, W); W >= 24
    x1 = jax.random.normal(k_x1, (B, 1, KH, W), jnp.float32)
    x2 = jax.random.normal(k_x2, (B, 1, KH, W), jnp.float32)

    params = init_params(k_params)
    packed = pack_params(params)

    out = net_forward(x1, x2, packed)
    out = jax.block_until_ready(out)
    assert out.shape == (B, 1) and out.dtype == jnp.float32
    assert bool(jnp.all(jnp.isfinite(out)))

    ref = net_reference(x1, x2, params)
    assert bool(jnp.allclose(out, ref, atol=2e-2)), (out, ref)

    print("KERNEL_OK")
</pallas_src>

<mosaic_0001>
module attributes {stable_mosaic.version = 11 : i64} {
  func.func @net_kernel(%arg0: i32, %arg1: memref<272x96xbf16, #tpu.memory_space<vmem>>, %arg2: memref<96x16xbf16, #tpu.memory_space<vmem>>, %arg3: memref<72x128xf32, #tpu.memory_space<vmem>>, %arg4: memref<1x8xf32, #tpu.memory_space<vmem>>) attributes {dimension_semantics = [#tpu.dimension_semantics<parallel>], iteration_bounds = array<i64: 1>, scalar_prefetch = 0 : i64, scratch_operands = 0 : i64, tpu.core_type = #tpu.core_type<tc>, window_params = [{transform_indices = @transform_0, window_bounds = array<i64: 272, 96>}, {pipeline_mode = #tpu.pipeline_mode<synchronous>, transform_indices = @transform_1, window_bounds = array<i64: 96, 16>}, {pipeline_mode = #tpu.pipeline_mode<synchronous>, transform_indices = @transform_2, window_bounds = array<i64: 72, 128>}, {transform_indices = @transform_3, window_bounds = array<i64: 1, 8>}]} {
    %c0 = arith.constant 0 : index
    %c0_0 = arith.constant 0 : index
    %0 = vector.load %arg1[%c0, %c0_0] : memref<272x96xbf16, #tpu.memory_space<vmem>>, vector<272x96xbf16>
    %c0_1 = arith.constant 0 : index
    %c0_2 = arith.constant 0 : index
    %1 = vector.load %arg2[%c0_1, %c0_2] : memref<96x16xbf16, #tpu.memory_space<vmem>>, vector<96x16xbf16>
    %cst = arith.constant dense<0.000000e+00> : vector<272x16xf32>
    %2 = tpu.matmul %0, %1, %cst {dimension_numbers = #tpu.dot_dimension_numbers<[1], [0], [0], [1], [0, 0, 1, 1], [], []>} : vector<272x96xbf16>, vector<96x16xbf16>, vector<272x16xf32> -> vector<272x16xf32>
    %c0_3 = arith.constant 0 : index
    %c0_4 = arith.constant 0 : index
    %3 = vector.load %arg3[%c0_3, %c0_4] : memref<72x128xf32, #tpu.memory_space<vmem>>, vector<1x16xf32>
    %4 = vector.broadcast %3 : vector<1x16xf32> to vector<272x16xf32>
    %5 = arith.addf %2, %4 : vector<272x16xf32>
    %cst_5 = arith.constant 0.000000e+00 : f32
    %6 = vector.broadcast %cst_5 : f32 to vector<272x16xf32>
    %7 = arith.maximumf %5, %6 : vector<272x16xf32>
    %8 = vector.shape_cast %7 : vector<272x16xf32> to vector<17x16x16xf32>
    %cst_6 = arith.constant dense<0xFF800000> : vector<16x16xf32>
    %9 = vector.multi_reduction <maximumf>, %8, %cst_6 [0] : vector<17x16x16xf32> to vector<16x16xf32>
    %cst_7 = arith.constant dense<0.000000e+00> : vector<16x16xf32>
    %10 = vector.multi_reduction <add>, %8, %cst_7 [0] : vector<17x16x16xf32> to vector<16x16xf32>
    %cst_8 = arith.constant 0.0588235296 : f32
    %11 = vector.broadcast %cst_8 : f32 to vector<16x16xf32>
    %12 = arith.mulf %10, %11 : vector<16x16xf32>
    %13 = vector.extract_strided_slice %9 {offsets = [0, 0], sizes = [8, 16], strides = [1, 1]} : vector<16x16xf32> to vector<8x16xf32>
    %c8 = arith.constant 8 : index
    %c0_9 = arith.constant 0 : index
    %14 = vector.load %arg3[%c8, %c0_9] : memref<72x128xf32, #tpu.memory_space<vmem>>, vector<16x128xf32>
    %cst_10 = arith.constant dense<0.000000e+00> : vector<8x128xf32>
    %15 = tpu.matmul %13, %14, %cst_10 {dimension_numbers = #tpu.dot_dimension_numbers<[1], [0], [0], [1], [0, 0, 1, 1], [], []>} : vector<8x16xf32>, vector<16x128xf32>, vector<8x128xf32> -> vector<8x128xf32>
    %16 = vector.extract_strided_slice %12 {offsets = [0, 0], sizes = [8, 16], strides = [1, 1]} : vector<16x16xf32> to vector<8x16xf32>
    %c24 = arith.constant 24 : index
    %c0_11 = arith.constant 0 : index
    %17 = vector.load %arg3[%c24, %c0_11] : memref<72x128xf32, #tpu.memory_space<vmem>>, vector<16x128xf32>
    %cst_12 = arith.constant dense<0.000000e+00> : vector<8x128xf32>
    %18 = tpu.matmul %16, %17, %cst_12 {dimension_numbers = #tpu.dot_dimension_numbers<[1], [0], [0], [1], [0, 0, 1, 1], [], []>} : vector<8x16xf32>, vector<16x128xf32>, vector<8x128xf32> -> vector<8x128xf32>
    %19 = arith.addf %15, %18 : vector<8x128xf32>
    %20 = vector.extract_strided_slice %9 {offsets = [8, 0], sizes = [8, 16], strides = [1, 1]} : vector<16x16xf32> to vector<8x16xf32>
    %c40 = arith.constant 40 : index
    %c0_13 = arith.constant 0 : index
    %21 = vector.load %arg3[%c40, %c0_13] : memref<72x128xf32, #tpu.memory_space<vmem>>, vector<16x128xf32>
    %cst_14 = arith.constant dense<0.000000e+00> : vector<8x128xf32>
    %22 = tpu.matmul %20, %21, %cst_14 {dimension_numbers = #tpu.dot_dimension_numbers<[1], [0], [0], [1], [0, 0, 1, 1], [], []>} : vector<8x16xf32>, vector<16x128xf32>, vector<8x128xf32> -> vector<8x128xf32>
    %23 = arith.addf %19, %22 : vector<8x128xf32>
    %24 = vector.extract_strided_slice %12 {offsets = [8, 0], sizes = [8, 16], strides = [1, 1]} : vector<16x16xf32> to vector<8x16xf32>
    %c56 = arith.constant 56 : index
    %c0_15 = arith.constant 0 : index
    %25 = vector.load %arg3[%c56, %c0_15] : memref<72x128xf32, #tpu.memory_space<vmem>>, vector<16x128xf32>
    %cst_16 = arith.constant dense<0.000000e+00> : vector<8x128xf32>
    %26 = tpu.matmul %24, %25, %cst_16 {dimension_numbers = #tpu.dot_dimension_numbers<[1], [0], [0], [1], [0, 0, 1, 1], [], []>} : vector<8x16xf32>, vector<16x128xf32>, vector<8x128xf32> -> vector<8x128xf32>
    %27 = arith.addf %23, %26 : vector<8x128xf32>
    %c1 = arith.constant 1 : index
    %c0_17 = arith.constant 0 : index
    %28 = vector.load %arg3[%c1, %c0_17] : memref<72x128xf32, #tpu.memory_space<vmem>>, vector<1x128xf32>
    %29 = vector.broadcast %28 : vector<1x128xf32> to vector<8x128xf32>
    %30 = arith.addf %27, %29 : vector<8x128xf32>
    %cst_18 = arith.constant 0.000000e+00 : f32
    %31 = vector.broadcast %cst_18 : f32 to vector<8x128xf32>
    %32 = arith.maximumf %30, %31 : vector<8x128xf32>
    %c2 = arith.constant 2 : index
    %c0_19 = arith.constant 0 : index
    %33 = vector.load %arg3[%c2, %c0_19] : memref<72x128xf32, #tpu.memory_space<vmem>>, vector<1x128xf32>
    %c3 = arith.constant 3 : index
    %c0_20 = arith.constant 0 : index
    %34 = vector.load %arg3[%c3, %c0_20] : memref<72x128xf32, #tpu.memory_space<vmem>>, vector<1x1xf32>
    %cst_21 = arith.constant dense<0.000000e+00> : vector<1x8xf32>
    %35 = tpu.matmul %33, %32, %cst_21 {dimension_numbers = #tpu.dot_dimension_numbers<[1], [1], [0], [0], [0, 0, 1, 0], [], []>} : vector<1x128xf32>, vector<8x128xf32>, vector<1x8xf32> -> vector<1x8xf32>
    %36 = vector.broadcast %34 : vector<1x1xf32> to vector<1x8xf32>
    %37 = arith.addf %35, %36 : vector<1x8xf32>
    %38 = arith.negf %37 : vector<1x8xf32>
    %39 = math.exp %38 : vector<1x8xf32>
    %cst_22 = arith.constant 1.000000e+00 : f32
    %40 = vector.broadcast %cst_22 : f32 to vector<1x8xf32>
    %41 = arith.addf %40, %39 : vector<1x8xf32>
    %42 = arith.divf %40, %41 : vector<1x8xf32>
    %c0_23 = arith.constant 0 : index
    %c0_24 = arith.constant 0 : index
    %43 = vector.load %arg4[%c0_23, %c0_24] : memref<1x8xf32, #tpu.memory_space<vmem>>, vector<1x8xf32>
    tpu.vector_store %arg4[%c0_23, %c0_24], %42 {strides = array<i32>} : memref<1x8xf32, #tpu.memory_space<vmem>>, vector<1x8xf32>,
    return
  }
  func.func @transform_0(%arg0: i32) -> (i32, i32) {
    %c0_i32 = arith.constant 0 : i32
    %c0_i32_0 = arith.constant 0 : i32
    return %arg0, %c0_i32 : i32, i32
  }
  func.func @transform_1(%arg0: i32) -> (i32, i32) {
    %c0_i32 = arith.constant 0 : i32
    %c0_i32_0 = arith.constant 0 : i32
    %c0_i32_1 = arith.constant 0 : i32
    return %c0_i32, %c0_i32_0 : i32, i32
  }
  func.func @transform_2(%arg0: i32) -> (i32, i32) {
    %c0_i32 = arith.constant 0 : i32
    %c0_i32_0 = arith.constant 0 : i32
    %c0_i32_1 = arith.constant 0 : i32
    return %c0_i32, %c0_i32_0 : i32, i32
  }
  func.func @transform_3(%arg0: i32) -> (i32, i32) {
    %c0_i32 = arith.constant 0 : i32
    %c0_i32_0 = arith.constant 0 : i32
    return %arg0, %c0_i32 : i32, i32
  }
}

</mosaic_0001>

<bundles_post_ra>
// kernel: net_forward.1
= control target key start
LH: loop header
LB: loop body
LE: loop exit
PB: predicated region body
PF: predicated region fallthrough
CT: control target
= control target key end

     0   :  { %v1228_v0 = vmov 0.0   ;;  %vm1229_vm0 = vmmov 0   ;;  %vm187_vm1 = vcmask 785408   ;;  %v1230_v26 = vmov 0.0|0.0   ;;  %s1673_s1 = inlined_call_operand.vmem [shape: bf16[96,16], index: 1, kind: input, shape index: {}]   ;;  %s1674_s0 = inlined_call_operand.vmem [shape: bf16[272,96], index: 0, kind: input, shape index: {}]   ;;  %s1675_s2 = inlined_call_operand.vmem [shape: f32[72,128], index: 2, kind: input, shape index: {}]   ;;  %s1676_s3 = inlined_call_operand.vmem [shape: f32[1,8], index: 3, kind: output, shape index: {}]  }
   0x1   :  { %1059 = vmatprep.subr.bf16.mxu0 %v1228_v0  ;;  %v1201_v1 = vld [vmem:[%s1673_s1] sm:$0xff]   ;;  %1071 = vmatprep.mubr.msk.bf16.mxu0 %vm1229_vm0, %v1228_v0  ;;  %v1202_v2 = vld [vmem:[%s1673_s1 + $0x8] sm:$0xff]   ;;  %v1203_v3 = vld [vmem:[%s1673_s1 + $0x10] sm:$0xff]   ;;  %vm442_vm2 = vcmask 130048   ;;  %vm969_vm3 = vcmask 57344  }
   0x2   :  { %1184 = vmatprep.subr.bf16.mxu1 %v1228_v0  ;;  %1111 = vmatprep.mubr.msk.bf16.mxu1 %vm1229_vm0, %v1228_v0  ;;  %v1204_v4 = vld [vmem:[%s1673_s1 + $0x18] sm:$0xff]   ;;  %v1205_v5 = vld [vmem:[%s1673_s1 + $0x20] sm:$0xff]   ;;  %v1206_v6 = vld [vmem:[%s1673_s1 + $0x28] sm:$0xff]  }
   0x3   :  { %1060 = vmatpush3.bf16.msra.mxu0 %v1201_v1  ;;  %1190 = vmatpush3.bf16.msra.mxu1 %v1201_v1  ;;  %v1207_v7 = vld [vmem:[%s1674_s0] sm:$0xff]   ;;  %v1211_v8 = vld [vmem:[%s1674_s0 + $0x50] sm:$0xff]   ;;  %v1208_v9 = vld [vmem:[%s1674_s0 + $0x8] sm:$0xff]  }
   0x4   :  { %1061 = vmatprep.subr.bf16.mxu0 %v1228_v0  ;;  %1185 = vmatprep.subr.bf16.mxu1 %v1228_v0  ;;  %v1213_v10 = vld [vmem:[%s1674_s0 + $0x58] sm:$0xff]   ;;  %v1209_v11 = vld [vmem:[%s1674_s0 + $0x10] sm:$0xff]   ;;  %v1215_v12 = vld [vmem:[%s1674_s0 + $0x60] sm:$0xff]  }
   0x5   :  { %v1210_v13 = vld [vmem:[%s1674_s0 + $0x18] sm:$0xff]   ;;  %v1217_v14 = vld [vmem:[%s1674_s0 + $0x68] sm:$0xff]   ;;  %v1212_v15 = vld [vmem:[%s1674_s0 + $0x20] sm:$0xff]  }
   0x6   :  { %v1219_v16 = vld [vmem:[%s1674_s0 + $0x70] sm:$0xff]   ;;  %v1214_v17 = vld [vmem:[%s1674_s0 + $0x28] sm:$0xff]   ;;  %v1221_v18 = vld [vmem:[%s1674_s0 + $0x78] sm:$0xff]  }
   0x7   :  { %1062 = vmatpush3.bf16.msra.mxu0 %v1202_v2  ;;  %1191 = vmatpush3.bf16.msra.mxu1 %v1202_v2  ;;  %v1216_v19 = vld [vmem:[%s1674_s0 + $0x30] sm:$0xff]   ;;  %v1223_v20 = vld [vmem:[%s1674_s0 + $0x80] sm:$0xff]   ;;  %v1218_v21 = vld [vmem:[%s1674_s0 + $0x38] sm:$0xff]  }
   0x8   :  { %1063 = vmatprep.subr.bf16.mxu0 %v1228_v0  ;;  %1186 = vmatprep.subr.bf16.mxu1 %v1228_v0  ;;  %v1220_v22 = vld [vmem:[%s1674_s0 + $0x40] sm:$0xff]   ;;  %v1222_v23 = vld [vmem:[%s1674_s0 + $0x48] sm:$0xff]   ;;  %v579_v24 = vld [vmem:[%s1675_s2 + $0x18] sm:$0xff] }
   0x9   :  { %v580_v25 = vld [vmem:[%s1675_s2 + $0x20] sm:$0xff] }
   0xa   :  { %v1173_v27 = vpack.c.bf16 %v580_v25, %v579_v24  ;;  %v1399_v32 = vld [vmem:[%s1675_s2] ss:$0 sm:$0xff] }
   0xb   :  { %1064 = vmatpush3.bf16.msra.mxu0 %v1203_v3  ;;  %1192 = vmatpush3.bf16.msra.mxu1 %v1203_v3 }
   0xc   :  { %1065 = vmatprep.subr.bf16.mxu0 %v1228_v0  ;;  %1187 = vmatprep.subr.bf16.mxu1 %v1228_v0 }
   0xf   :  { %1066 = vmatpush3.bf16.msra.mxu0 %v1204_v4  ;;  %1193 = vmatpush3.bf16.msra.mxu1 %v1204_v4 }
  0x10   :  { %1067 = vmatprep.subr.bf16.mxu0 %v1228_v0  ;;  %1188 = vmatprep.subr.bf16.mxu1 %v1228_v0 }
  0x13   :  { %1068 = vmatpush3.bf16.msra.mxu0 %v1205_v5  ;;  %1194 = vmatpush3.bf16.msra.mxu1 %v1205_v5 }
  0x14   :  { %1069 = vmatprep.subr.bf16.mxu0 %v1228_v0  ;;  %1189 = vmatprep.subr.bf16.mxu1 %v1228_v0 }
  0x17   :  { %1070 = vmatpush3.bf16.msra.mxu0 %v1206_v6  ;;  %1195 = vmatpush3.bf16.msra.mxu1 %v1206_v6 }
  0x18   :  { %1172 = vmatprep.subr.bf16.mxu1 %v1230_v26 }
  0x1a   :  { %1072 = vmatmul.mubr.msk.bf16.vlgmr.msra.gmra.mrb[0].mxu0 %vm187_vm1, %v1207_v7  ;;  %1112 = vmatmul.mubr.msk.bf16.vlgmr.msra.gmra.mrb[0].mxu1 %vm187_vm1, %v1211_v8 }
  0x1b   :  { %1075 = vmatprep.mubr.msk.bf16.mxu0 %vm1229_vm0, %v1228_v0  ;;  %1115 = vmatprep.mubr.msk.bf16.mxu1 %vm1229_vm0, %v1228_v0 }
  0x1c   :  { %1174 = vmatpush3.bf16.msra.mxu1 %v1173_v27 }
  0x1d   :  { %1175 = vmatprep.subr.bf16.mxu1 %v1230_v26 }
  0x22   :  { %1076 = vmatmul.mubr.msk.bf16.gmra.mrb[4].mxu0 %vm187_vm1, %v1208_v9  ;;  %1116 = vmatmul.mubr.msk.bf16.gmra.mrb[4].mxu1 %vm187_vm1, %v1213_v10 }
  0x23   :  { %1079 = vmatprep.mubr.msk.bf16.mxu0 %vm1229_vm0, %v1228_v0  ;;  %1119 = vmatprep.mubr.msk.bf16.mxu1 %vm1229_vm0, %v1228_v0 }
  0x2a   :  { %1080 = vmatmul.mubr.msk.bf16.gmra.mrb[8].mxu0 %vm187_vm1, %v1209_v11  ;;  %1120 = vmatmul.mubr.msk.bf16.gmra.mrb[8].mxu1 %vm187_vm1, %v1215_v12 }
  0x2b   :  { %1083 = vmatprep.mubr.msk.bf16.mxu0 %vm1229_vm0, %v1228_v0  ;;  %1123 = vmatprep.mubr.msk.bf16.mxu1 %vm1229_vm0, %v1228_v0 }
  0x32   :  { %1084 = vmatmul.mubr.msk.bf16.gmra.mrb[12].mxu0 %vm187_vm1, %v1210_v13  ;;  %1124 = vmatmul.mubr.msk.bf16.gmra.mrb[12].mxu1 %vm187_vm1, %v1217_v14 }
  0x33   :  { %1087 = vmatprep.mubr.msk.bf16.mxu0 %vm1229_vm0, %v1228_v0  ;;  %1127 = vmatprep.mubr.msk.bf16.mxu1 %vm1229_vm0, %v1228_v0 }
  0x3a   :  { %1088 = vmatmul.mubr.msk.bf16.gmra.mrb[16].mxu0 %vm187_vm1, %v1212_v15  ;;  %1128 = vmatmul.mubr.msk.bf16.gmra.mrb[16].mxu1 %vm187_vm1, %v1219_v16 }
  0x3b   :  { %1091 = vmatprep.mubr.msk.bf16.mxu0 %vm1229_vm0, %v1228_v0  ;;  %1131 = vmatprep.mubr.msk.bf16.mxu1 %vm1229_vm0, %v1228_v0 }
  0x42   :  { %1092 = vmatmul.mubr.msk.bf16.gmra.mrb[20].mxu0 %vm187_vm1, %v1214_v17  ;;  %1132 = vmatmul.mubr.msk.bf16.gmra.mrb[20].mxu1 %vm187_vm1, %v1221_v18 }
  0x43   :  { %1095 = vmatprep.mubr.msk.bf16.mxu0 %vm1229_vm0, %v1228_v0  ;;  %1135 = vmatprep.mubr.msk.bf16.mxu1 %vm1229_vm0, %v1228_v0 }
  0x4a   :  { %1096 = vmatmul.mubr.msk.bf16.gmra.mrb[24].mxu0 %vm187_vm1, %v1216_v19  ;;  %1136 = vmatmul.mubr.msk.bf16.gmra.mrb[24].mxu1 %vm187_vm1, %v1223_v20 }
  0x4b   :  { %1099 = vmatprep.mubr.msk.bf16.mxu0 %vm1229_vm0, %v1228_v0  ;;  %1143 = vmatprep.mubr.msk.f32.mxu1 %vm1229_vm0, %v1228_v0 }
  0x52   :  { %1100 = vmatmul.mubr.msk.bf16.gmra.mrb[28].mxu0 %vm187_vm1, %v1218_v21 }
  0x53   :  { %1103 = vmatprep.mubr.msk.bf16.mxu0 %vm1229_vm0, %v1228_v0 }
  0x5a   :  { %1104 = vmatmul.mubr.msk.bf16.gmra.mrb[32].mxu0 %vm187_vm1, %v1220_v22 }
  0x5b   :  { %1107 = vmatprep.mubr.msk.bf16.mxu0 %vm1229_vm0, %v1228_v0 }
  0x62   :  { %1108 = vmatmul.mubr.msk.bf16.gmra.mrb[36].mxu0 %vm187_vm1, %v1222_v23 }
  0xed   :  { %v273_v28 = vpop.f32.mrb[0].mxu0  ;;  %v1394_v29 = vpop.f32.mrb[0].mxu1 }
  0xee   :  { %v1073_v30 = vpop.f32.mrb[1].mxu0  ;;  %v1113_v31 = vpop.f32.mrb[1].mxu1  ;;  %v274_v37 = vadd.f32 %v1399_v32, %v273_v28 }
  0xef   :  { %v276_v33 = vpop.f32.mrb[2].mxu0  ;;  %v1401_v34 = vpop.f32.mrb[2].mxu1 }
  0xf0   :  { %v1074_v35 = vpop.f32.mrb[3].mxu0  ;;  %v1114_v36 = vpop.f32.mrb[3].mxu1  ;;  %v277_v38 = vadd.f32 %v1399_v32, %v276_v33  ;;  %v408_v41 = vmax.f32 %v274_v37, 0.0 }
  0xf2   :  { %v409_v47 = vmax.f32 %v277_v38, 0.0  ;;  %v509_v52 = vsel %vm442_vm2, %v408_v41, 0.0  ;;  %v443_v7 = vsel %vm442_vm2, %v408_v41, -inf }
  0xf4   :  { %v542_v56 = vsel %vm442_vm2, %v409_v47, 0.0  ;;  %v476_v13 = vsel %vm442_vm2, %v409_v47, -inf }
  0xf5   :  { %v281_v39 = vpop.f32.mrb[4].mxu0  ;;  %v1405_v40 = vpop.f32.mrb[4].mxu1 }
  0xf6   :  { %v282_v42 = vadd.f32 %v1399_v32, %v281_v39  ;;  %v1077_v43 = vpop.f32.mrb[5].mxu0  ;;  %v1117_v44 = vpop.f32.mrb[5].mxu1 }
  0xf7   :  { %v284_v45 = vpop.f32.mrb[6].mxu0  ;;  %v1408_v46 = vpop.f32.mrb[6].mxu1 }
  0xf8   :  { %v410_v48 = vmax.f32 %v282_v42, 0.0  ;;  %v285_v49 = vadd.f32 %v1399_v32, %v284_v45  ;;  %v1078_v50 = vpop.f32.mrb[7].mxu0  ;;  %v1118_v51 = vpop.f32.mrb[7].mxu1 }
  0xfa   :  { %v510_v53 = vsel %vm442_vm2, %v410_v48, 0.0  ;;  %v411_v54 = vmax.f32 %v285_v49, 0.0  ;;  %v444_v31 = vsel %vm442_vm2, %v410_v48, -inf }
  0xfb   :  { %v511_v55 = vadd.f32 %v510_v53, %v509_v52 }
  0xfc   :  { %v543_v57 = vsel %vm442_vm2, %v411_v54, 0.0  ;;  %v477_v39 = vsel %vm442_vm2, %v411_v54, -inf }
  0xfd   :  { %v544_v58 = vadd.f32 %v543_v57, %v542_v56  ;;  %v289_v59 = vpop.f32.mrb[8].mxu0  ;;  %v1415_v60 = vpop.f32.mrb[8].mxu1 }
  0xfe   :  { %v290_v61 = vadd.f32 %v1399_v32, %v289_v59  ;;  %v1081_v62 = vpop.f32.mrb[9].mxu0  ;;  %v1121_v63 = vpop.f32.mrb[9].mxu1 }
  0xff   :  { %v292_v1 = vpop.f32.mrb[10].mxu0  ;;  %v1418_v2 = vpop.f32.mrb[10].mxu1 }
 0x100   :  { %v412_v3 = vmax.f32 %v290_v61, 0.0  ;;  %v293_v4 = vadd.f32 %v1399_v32, %v292_v1  ;;  %v1082_v5 = vpop.f32.mrb[11].mxu0  ;;  %v1122_v6 = vpop.f32.mrb[11].mxu1 }
 0x102   :  { %v445_v8 = vsel %vm442_vm2, %v412_v3, -inf  ;;  %v512_v9 = vsel %vm442_vm2, %v412_v3, 0.0  ;;  %v413_v10 = vmax.f32 %v293_v4, 0.0 }
 0x103   :  { %v446_v11 = vmax.f32 %v443_v7, %v445_v8  ;;  %v513_v12 = vadd.f32 %v512_v9, %v511_v55 }
 0x104   :  { %v478_v14 = vsel %vm442_vm2, %v413_v10, -inf  ;;  %v545_v15 = vsel %vm442_vm2, %v413_v10, 0.0 }
 0x105   :  { %v479_v16 = vmax.f32 %v476_v13, %v478_v14  ;;  %v546_v17 = vadd.f32 %v545_v15, %v544_v58  ;;  %v297_v18 = vpop.f32.mrb[12].mxu0  ;;  %v1427_v19 = vpop.f32.mrb[12].mxu1 }
 0x106   :  { %v298_v20 = vadd.f32 %v1399_v32, %v297_v18  ;;  %v1085_v21 = vpop.f32.mrb[13].mxu0  ;;  %v1125_v22 = vpop.f32.mrb[13].mxu1 }
 0x107   :  { %v300_v23 = vpop.f32.mrb[14].mxu0  ;;  %v1430_v24 = vpop.f32.mrb[14].mxu1 }
 0x108   :  { %v414_v25 = vmax.f32 %v298_v20, 0.0  ;;  %v301_v27 = vadd.f32 %v1399_v32, %v300_v23  ;;  %v1086_v28 = vpop.f32.mrb[15].mxu0  ;;  %v1126_v30 = vpop.f32.mrb[15].mxu1 }
 0x10a   :  { %v447_v33 = vsel %vm442_vm2, %v414_v25, -inf  ;;  %v514_v35 = vsel %vm442_vm2, %v414_v25, 0.0  ;;  %v415_v36 = vmax.f32 %v301_v27, 0.0 }
 0x10b   :  { %v448_v37 = vmax.f32 %v444_v31, %v447_v33  ;;  %v515_v38 = vadd.f32 %v514_v35, %v513_v12 }
 0x10c   :  { %v480_v41 = vsel %vm442_vm2, %v415_v36, -inf  ;;  %v547_v42 = vsel %vm442_vm2, %v415_v36, 0.0 }
 0x10d   :  { %v481_v43 = vmax.f32 %v477_v39, %v480_v41  ;;  %v548_v44 = vadd.f32 %v547_v42, %v546_v17  ;;  %v305_v45 = vpop.f32.mrb[16].mxu0  ;;  %v1439_v47 = vpop.f32.mrb[16].mxu1 }
 0x10e   :  { %v306_v48 = vadd.f32 %v1399_v32, %v305_v45  ;;  %v1089_v49 = vpop.f32.mrb[17].mxu0  ;;  %v1129_v50 = vpop.f32.mrb[17].mxu1 }
 0x10f   :  { %v308_v51 = vpop.f32.mrb[18].mxu0  ;;  %v1442_v52 = vpop.f32.mrb[18].mxu1 }
 0x110   :  { %v416_v53 = vmax.f32 %v306_v48, 0.0  ;;  %v309_v55 = vadd.f32 %v1399_v32, %v308_v51  ;;  %v1090_v54 = vpop.f32.mrb[19].mxu0  ;;  %v1130_v56 = vpop.f32.mrb[19].mxu1 }
 0x112   :  { %v449_v57 = vsel %vm442_vm2, %v416_v53, -inf  ;;  %v516_v58 = vsel %vm442_vm2, %v416_v53, 0.0  ;;  %v417_v59 = vmax.f32 %v309_v55, 0.0  ;;  %v354_v53 = vadd.f32 %v1399_v32, %v1394_v29 }
 0x113   :  { %v1447_v61 = vmax.f32 %v446_v11, %v449_v57  ;;  %v517_v62 = vadd.f32 %v516_v58, %v515_v38  ;;  %v357_v57 = vadd.f32 %v1399_v32, %v1401_v34 }
 0x114   :  { %v482_v63 = vsel %vm442_vm2, %v417_v59, -inf  ;;  %v549_v1 = vsel %vm442_vm2, %v417_v59, 0.0  ;;  %v428_v29 = vmax.f32 %v354_v53, 0.0 }
 0x115   :  { %v1451_v3 = vmax.f32 %v479_v16, %v482_v63  ;;  %v550_v4 = vadd.f32 %v549_v1, %v548_v44  ;;  %v313_v5 = vpop.f32.mrb[20].mxu0  ;;  %v1453_v6 = vpop.f32.mrb[20].mxu1 }
 0x116   :  { %v314_v7 = vadd.f32 %v1399_v32, %v313_v5  ;;  %v1093_v8 = vpop.f32.mrb[21].mxu0  ;;  %v1133_v9 = vpop.f32.mrb[21].mxu1  ;;  %v429_v5 = vmax.f32 %v357_v57, 0.0 }
 0x117   :  { %v316_v10 = vpop.f32.mrb[22].mxu0  ;;  %v1456_v12 = vpop.f32.mrb[22].mxu1  ;;  %v1492_v9 = vadd.f32 %v1399_v32, %v1415_v60 }
 0x118   :  { %v418_v11 = vmax.f32 %v314_v7, 0.0  ;;  %v317_v13 = vadd.f32 %v1399_v32, %v316_v10  ;;  %v1094_v14 = vpop.f32.mrb[23].mxu0  ;;  %v1134_v15 = vpop.f32.mrb[23].mxu1 }
 0x119   :  { %v1506_v15 = vadd.f32 %v1399_v32, %v1418_v2  ;;  %v494_v2 = vsel %vm442_vm2, %v429_v5, -inf }
 0x11a   :  { %v451_v17 = vsel %vm442_vm2, %v418_v11, -inf  ;;  %v518_v16 = vsel %vm442_vm2, %v418_v11, 0.0  ;;  %v419_v18 = vmax.f32 %v317_v13, 0.0  ;;  %v1498_v11 = vadd.f32 %v1399_v32, %v1408_v46 }
 0x11b   :  { %v1461_v20 = vmax.f32 %v448_v37, %v451_v17  ;;  %v519_v21 = vadd.f32 %v518_v16, %v517_v62  ;;  %v461_v46 = vsel %vm442_vm2, %v428_v29, -inf }
 0x11c   :  { %v484_v22 = vsel %vm442_vm2, %v419_v18, -inf  ;;  %v551_v23 = vsel %vm442_vm2, %v419_v18, 0.0  ;;  %v1512_v18 = vadd.f32 %v1399_v32, %v1439_v47 }
 0x11d   :  { %v1465_v25 = vmax.f32 %v481_v43, %v484_v22  ;;  %v552_v27 = vadd.f32 %v551_v23, %v550_v4  ;;  %v321_v28 = vpop.f32.mrb[24].mxu0  ;;  %v401_v30 = vpop.f32.mrb[24].mxu1 }
 0x11e   :  { %v322_v31 = vadd.f32 %v1399_v32, %v321_v28  ;;  %v1097_v33 = vpop.f32.mrb[25].mxu0  ;;  %v1137_v35 = vpop.f32.mrb[25].mxu1 }
 0x11f   :  { %v324_v36 = vpop.f32.mrb[26].mxu0  ;;  %v404_v38 = vpop.f32.mrb[26].mxu1 }
 0x120   :  { %v420_v39 = vmax.f32 %v322_v31, 0.0  ;;  %v325_v37 = vadd.f32 %v1399_v32, %v324_v36  ;;  %v1098_v41 = vpop.f32.mrb[27].mxu0  ;;  %v1138_v42 = vpop.f32.mrb[27].mxu1  ;;  %v432_v31 = vmax.f32 %v1492_v9, 0.0  ;;  %v1530_v36 = vadd.f32 %v1399_v32, %v1442_v52 }
 0x121   :  { %v431_v42 = vmax.f32 %v1498_v11, 0.0  ;;  %v1542_v52 = vadd.f32 %v1399_v32, %v404_v38 }
 0x122   :  { %v453_v44 = vsel %vm442_vm2, %v420_v39, -inf  ;;  %v520_v45 = vsel %vm442_vm2, %v420_v39, 0.0  ;;  %v421_v43 = vmax.f32 %v325_v37, 0.0  ;;  %v1533_v37 = vadd.f32 %v1399_v32, %v401_v30 }
 0x123   :  { %v454_v48 = vmax.f32 %v1447_v61, %v453_v44  ;;  %v521_v49 = vadd.f32 %v520_v45, %v519_v21  ;;  %v362_v61 = vadd.f32 %v1399_v32, %v1405_v40  ;;  %v1516_v21 = vsel %vm442_vm2, %v428_v29, 0.0 }
 0x124   :  { %v1473_v50 = vsel %vm442_vm2, %v421_v43, -inf  ;;  %v553_v51 = vsel %vm442_vm2, %v421_v43, 0.0  ;;  %v433_v44 = vmax.f32 %v1506_v15, 0.0  ;;  %v436_v45 = vmax.f32 %v1512_v18, 0.0  ;;  %v577_v18 = vld [vmem:[%s1675_s2 + $0x8] sm:$0xff] }
 0x125   :  { %v487_v55 = vmax.f32 %v1451_v3, %v1473_v50  ;;  %v554_v54 = vadd.f32 %v553_v51, %v552_v27  ;;  %v329_v56 = vpop.f32.mrb[28].mxu0  ;;  %v430_v34 = vmax.f32 %v362_v61, 0.0  ;;  %v1521_v27 = vsel %vm442_vm2, %v429_v5, 0.0 }
 0x126   :  { %v330_v58 = vadd.f32 %v1399_v32, %v329_v56  ;;  %v1101_v59 = vpop.f32.mrb[29].mxu0  ;;  %v465_v30 = vsel %vm442_vm2, %v432_v31, -inf  ;;  %v1549_v51 = vadd.f32 %v1399_v32, %v1427_v19  ;;  %v498_v19 = vsel %vm442_vm2, %v433_v44, -inf }
 0x127   :  { %v332_v62 = vpop.f32.mrb[30].mxu0  ;;  %v1524_v28 = vsel %vm442_vm2, %v430_v34, -inf  ;;  %v530_v41 = vsel %vm442_vm2, %v430_v34, 0.0  ;;  %v440_v59 = vmax.f32 %v1533_v37, 0.0  ;;  %v441_v5 = vmax.f32 %v1542_v52, 0.0 }
 0x128   :  { %v422_v63 = vmax.f32 %v330_v58, 0.0  ;;  %v333_v1 = vadd.f32 %v1399_v32, %v332_v62  ;;  %v1102_v4 = vpop.f32.mrb[31].mxu0  ;;  %v437_v58 = vmax.f32 %v1530_v36, 0.0 }
 0x129   :  { %v573_v37 = vsel %vm442_vm2, %v441_v5, 0.0 }
 0x12a   :  { %v1487_v3 = vsel %vm442_vm2, %v422_v63, -inf  ;;  %v522_v7 = vsel %vm442_vm2, %v422_v63, 0.0  ;;  %v423_v8 = vmax.f32 %v333_v1, 0.0  ;;  %v1557_v63 = vadd.f32 %v1399_v32, %v1453_v6 }
 0x12b   :  { %v456_v40 = vmax.f32 %v1461_v20, %v1487_v3  ;;  %v523_v10 = vadd.f32 %v522_v7, %v521_v49  ;;  %v381_v6 = vadd.f32 %v1399_v32, %v1430_v24  ;;  %v397_v24 = vadd.f32 %v1399_v32, %v1456_v12 }
 0x12c   :  { %v1501_v13 = vsel %vm442_vm2, %v423_v8, -inf  ;;  %v555_v14 = vsel %vm442_vm2, %v423_v8, 0.0  ;;  %v569_v15 = vsel %vm442_vm2, %v437_v58, 0.0 }
 0x12d   :  { %v489_v60 = vmax.f32 %v1465_v25, %v1501_v13  ;;  %v556_v17 = vadd.f32 %v555_v14, %v554_v54  ;;  %v337_v16 = vpop.f32.mrb[32].mxu0  ;;  %v435_v12 = vmax.f32 %v381_v6, 0.0  ;;  %v532_v25 = vsel %vm442_vm2, %v432_v31, 0.0 }
 0x12e   :  { %v338_v22 = vadd.f32 %v1399_v32, %v337_v16  ;;  %v1105_v23 = vpop.f32.mrb[33].mxu0 }
 0x12f   :  { %v340_v47 = vpop.f32.mrb[34].mxu0  ;;  %v500_v13 = vsel %vm442_vm2, %v435_v12, -inf  ;;  %v567_v31 = vsel %vm442_vm2, %v435_v12, 0.0 }
 0x130   :  { %v424_v33 = vmax.f32 %v338_v22, 0.0  ;;  %v341_v35 = vadd.f32 %v1399_v32, %v340_v47  ;;  %v1106_v39 = vpop.f32.mrb[35].mxu0  ;;  %v438_v47 = vmax.f32 %v1557_v63, 0.0 }
 0x131   :  { %v506_v39 = vsel %vm442_vm2, %v441_v5, -inf  ;;  %v803_v5 = vld [vmem:[%s1675_s2 + $0x38] sm:$0xff] }
 0x132   :  { %v457_v43 = vsel %vm442_vm2, %v424_v33, -inf  ;;  %v524_v49 = vsel %vm442_vm2, %v424_v33, 0.0  ;;  %v425_v50 = vmax.f32 %v341_v35, 0.0 }
 0x133   :  { %v458_v53 = vmax.f32 %v454_v48, %v457_v43  ;;  %v525_v54 = vadd.f32 %v524_v49, %v523_v10  ;;  %v469_v48 = vsel %vm442_vm2, %v436_v45, -inf  ;;  %v502_v10 = vsel %vm442_vm2, %v437_v58, -inf }
 0x134   :  { %v490_v56 = vsel %vm442_vm2, %v425_v50, -inf  ;;  %v557_v57 = vsel %vm442_vm2, %v425_v50, 0.0 }
 0x135   :  { %v462_v38 = vmax.f32 %v458_v53, %v461_v46  ;;  %v491_v61 = vmax.f32 %v487_v55, %v490_v56  ;;  %v558_v62 = vadd.f32 %v557_v57, %v556_v17  ;;  %v345_v1 = vpop.f32.mrb[36].mxu0  ;;  %v434_v55 = vmax.f32 %v1549_v51, 0.0 }
 0x136   :  { %v346_v4 = vadd.f32 %v1399_v32, %v345_v1  ;;  %v1109_v29 = vpop.f32.mrb[37].mxu0  ;;  %v473_v17 = vsel %vm442_vm2, %v440_v59, -inf }
 0x137   :  { %v466_v7 = vmax.f32 %v462_v38, %v465_v30  ;;  %v495_v8 = vmax.f32 %v491_v61, %v494_v2  ;;  %v348_v34 = vpop.f32.mrb[38].mxu0  ;;  %v439_v38 = vmax.f32 %v397_v24, 0.0  ;;  %v804_v24 = vld [vmem:[%s1675_s2 + $0x40] sm:$0xff] }
 0x138   :  { %v426_v14 = vmax.f32 %v346_v4, 0.0  ;;  %v349_v16 = vadd.f32 %v1399_v32, %v348_v34  ;;  %v1110_v46 = vpop.f32.mrb[39].mxu0  ;;  %v496_v32 = vsel %vm442_vm2, %v431_v42, -inf }
 0x139   :  { %v470_v22 = vmax.f32 %v466_v7, %v469_v48  ;;  %v499_v23 = vmax.f32 %v495_v8, %v498_v19  ;;  %v504_v11 = vsel %vm442_vm2, %v439_v38, -inf  ;;  %v536_v7 = vsel %vm442_vm2, %v436_v45, 0.0  ;;  %v578_v45 = vld [vmem:[%s1675_s2 + $0x10] sm:$0xff] }
 0x13a   :  { %v459_v2 = vsel %vm442_vm2, %v426_v14, -inf  ;;  %v526_v33 = vsel %vm442_vm2, %v426_v14, 0.0  ;;  %v427_v35 = vmax.f32 %v349_v16, 0.0  ;;  %v571_v36 = vsel %vm442_vm2, %v439_v38, 0.0 }
 0x13b   :  { %v503_v43 = vmax.f32 %v499_v23, %v502_v10  ;;  %v460_v49 = vmax.f32 %v456_v40, %v459_v2  ;;  %v527_v50 = vadd.f32 %v526_v33, %v525_v54  ;;  %v474_v30 = vmax.f32 %v470_v22, %v473_v17  ;;  %v727_v23 = vld [vmem:[%s1675_s2 + $0x28] sm:$0xff] }
 0x13c   :  { %v492_v51 = vsel %vm442_vm2, %v427_v35, -inf  ;;  %v559_v53 = vsel %vm442_vm2, %v427_v35, 0.0  ;;  %v467_v40 = vsel %vm442_vm2, %v434_v55, -inf  ;;  %v471_v54 = vsel %vm442_vm2, %v438_v47, -inf  ;;  %v887_v35 = vld [vmem:[%s1675_s2 + $0x3] sm:$0x1] }
 0x13d   :  { %v464_v56 = vmax.f32 %v460_v49, %v1524_v28  ;;  %v529_v57 = vadd.f32 %v1516_v21, %v527_v50  ;;  %v493_v20 = vmax.f32 %v489_v60, %v492_v51  ;;  %v560_v3 = vadd.f32 %v559_v53, %v558_v62 }
 0x13e   :  { %v507_v61 = vmax.f32 %v503_v43, %v506_v39  ;;  %v563_v21 = vsel %vm442_vm2, %v431_v42, 0.0  ;;  %v1176_v46 = vpack.c.bf16 %v578_v45, %v577_v18  ;;  %v1182_v2 = vpack.c.bf16 %v804_v24, %v803_v5 }
 0x13f   :  { %v468_v63 = vmax.f32 %v464_v56, %v467_v40  ;;  %v531_v1 = vadd.f32 %v530_v41, %v529_v57  ;;  %v497_v19 = vmax.f32 %v493_v20, %v496_v32  ;;  %v562_v48 = vadd.f32 %v1521_v27, %v560_v3  ;;  %v886_v40 = vld [vmem:[%s1675_s2 + $0x2] sm:$0x1] }
 0x140   :  { %v565_v41 = vsel %vm442_vm2, %v433_v44, 0.0  ;;  %v534_v27 = vsel %vm442_vm2, %v434_v55, 0.0  ;;  %v538_v44 = vsel %vm442_vm2, %v438_v47, 0.0  ;;  %v540_v55 = vsel %vm442_vm2, %v440_v59, 0.0  ;;  %v728_v47 = vld [vmem:[%s1675_s2 + $0x30] sm:$0xff] }
 0x141   :  { %v533_v60 = vadd.f32 %v532_v25, %v531_v1  ;;  %v472_v28 = vmax.f32 %v468_v63, %v471_v54  ;;  %v501_v62 = vmax.f32 %v497_v19, %v500_v13  ;;  %v564_v4 = vadd.f32 %v563_v21, %v562_v48 }
 0x142   :  { %v1179_v52 = vpack.c.bf16 %v728_v47, %v727_v23  ;;  %v1231_v39 = vmov 0  }
 0x143   :  { %v475_v29 = vmax.f32 %v474_v30, %v472_v28  ;;  %v535_v42 = vadd.f32 %v534_v27, %v533_v60  ;;  %v566_v6 = vadd.f32 %v565_v41, %v564_v4  ;;  %v505_v9 = vmax.f32 %v501_v62, %v504_v11  ;;  %1200 = vset.pattern.permute.xlu0 %v1231_v39 }
 0x144   :  { %890 = vperm.xlu0 %1200, %v887_v35  }
 0x145   :  { %v537_v8 = vadd.f32 %v536_v7, %v535_v42  ;;  %v508_v34 = vmax.f32 %v507_v61, %v505_v9  ;;  %v568_v10 = vadd.f32 %v567_v31, %v566_v6 }
 0x147   :  { %v539_v14 = vadd.f32 %v538_v44, %v537_v8  ;;  %v570_v17 = vadd.f32 %v569_v15, %v568_v10 }
 0x149   :  { %v541_v16 = vadd.f32 %v540_v55, %v539_v14  ;;  %v572_v58 = vadd.f32 %v571_v36, %v570_v17 }
 0x14b   :  { %v575_v59 = vmul.f32 0.05882353, %v541_v16  ;;  %v574_v22 = vadd.f32 %v573_v37, %v572_v58 }
 0x14d   :  { %1144 = vmatmul.mubr.msk.f32.vlgmr.msra.gmra.mrb[28].mxu1 %vm442_vm2, %v575_v59  ;;  %v576_v33 = vmul.f32 0.05882353, %v574_v22 }
 0x14e   :  { %1177 = vmatpush3.bf16.msra.mxu1 %v1176_v46  ;;  %1150 = vmatprep.mubr.msk.f32.mxu1 %vm1229_vm0, %v1228_v0 }
 0x14f   :  { %1178 = vmatprep.subr.bf16.mxu1 %v1230_v26 }
 0x151   :  { %1151 = vmatmul.mubr.msk.f32.vlgmr.msra.gmra.mrb[30].mxu1 %vm442_vm2, %v475_v29 }
 0x152   :  { %1180 = vmatpush3.bf16.msra.mxu1 %v1179_v52  ;;  %1157 = vmatprep.mubr.msk.f32.mxu1 %vm1229_vm0, %v1228_v0 }
 0x153   :  { %1181 = vmatprep.subr.bf16.mxu1 %v1230_v26 }
 0x155   :  { %1158 = vmatmul.mubr.msk.f32.vlgmr.msra.gmra.mrb[32].mxu1 %vm442_vm2, %v508_v34 }
 0x156   :  { %1183 = vmatpush3.bf16.msra.mxu1 %v1182_v2  ;;  %1164 = vmatprep.mubr.msk.f32.mxu1 %vm1229_vm0, %v1228_v0 }
 0x157   :  { %1167 = vmatprep.subr.mxu1 %v1228_v0 }
 0x159   :  { %1165 = vmatmul.mubr.msk.f32.vlgmr.msra.gmra.mrb[34].mxu1 %vm442_vm2, %v576_v33 }
 0x15a   :  { %1169 = vmatprep.mubr.msk.f32.mxu1 %vm1229_vm0, %v1228_v0  ;;  %v1020_v0 = vld [vmem:[%s1675_s2 + $0x1] ss:$0 sm:$0xff] }
 0x1c3   :  { %v891_v54 = vpop.permute.xlu0 %890 }
 0x220   :  { %v650_v26 = vpop.f32.mrb[28].mxu1 }
 0x221   :  { %v1145_v43 = vpop.f32.mrb[29].mxu1 }
 0x224   :  { %v723_v49 = vpop.f32.mrb[30].mxu1 }
 0x225   :  { %v724_v50 = vadd.f32 %v723_v49, %v650_v26  ;;  %v1152_v30 = vpop.f32.mrb[31].mxu1 }
 0x228   :  { %v798_v32 = vpop.f32.mrb[32].mxu1 }
 0x229   :  { %v802_v12 = vadd.f32 %v798_v32, %v724_v50  ;;  %v1159_v51 = vpop.f32.mrb[33].mxu1 }
 0x22c   :  { %v874_v53 = vpop.f32.mrb[34].mxu1 }
 0x22d   :  { %v878_v56 = vadd.f32 %v874_v53, %v802_v12  ;;  %v1166_v57 = vpop.f32.mrb[35].mxu1 }
 0x22f   :  { %v884_v20 = vadd.f32 %v1020_v0, %v878_v56 }
 0x231   :  { %v885_v3 = vmax.f32 %v884_v20, 0.0 }
 0x233   :  { %1168 = vmatpush3.xpose.msra.mxu1 %v885_v3 }
 0x236   :  { %1170 = vmatmul.mubr.f32.vlgmr.msra.gmra.mrb[36].mxu1 %v886_v40 }
 0x309   :  { %v959_v38 = vpop.f32.mrb[36].mxu1 }
 0x30a   :  { %v960_v61 = vadd.f32 %v959_v38, %v891_v54  ;;  %v1171_v63 = vpop.f32.mrb[37].mxu1 }
 0x30c   :  { %v1021_v1 = vmul.f32 -1.442695, %v960_v61 }
 0x30e   :  { %1224 = vpow2.f32 %v1021_v1 }
 0x318   :  { %v1225_v19 = vpop.eup %1224 }
 0x319   :  { %v966_v48 = vadd.f32 1.0, %v1225_v19 }
 0x31b   :  { %1226 = vrcp.f32 %v966_v48 }
 0x325   :  { %v1227_v21 = vpop.eup %1226 }
 0x326   :  { %970 = vst.msk [vmem:[%s1676_s3] sm:$0x1] %vm969_vm3, %v1227_v21 }

</bundles_post_ra>
